<compile_context>
chip_gen: v7x
topology: tpu7x:2x2x1
jax: 0.10.0
libtpu: 0.0.40
codegen_flags: <defaults>
</compile_context>

<pallas_src>
import functools

import jax
import jax.numpy as jnp
import numpy as np
from jax import lax
from jax.experimental import pallas as pl
from jax.experimental.pallas import tpu as pltpu


def _mha_kernel(q_ref, k_ref, v_ref, wq_ref, wk_ref, wv_ref,
                out_ref, attn_ref, ks_ref, vs_ref, *, n_heads, d_k, d_v):
    # q_ref: (1, tq, d_model) bf16; k_ref/v_ref: (1, Lk, d_model) bf16
    # wq_ref/wk_ref: (d_model, H*d_k) bf16 (scale folded into wq); wv_ref: (d_model, H*d_v) bf16
    # ks_ref: (Lk, H*d_k) bf16 scratch; vs_ref: (Lk, H*d_v) bf16 scratch

    # Project K and V once per batch; cache in VMEM scratch for the remaining
    # q-tiles of this batch (inner grid axis is "arbitrary" -> serial, i==0 first).
    @pl.when(pl.program_id(1) == 0)
    def _():
        k = k_ref[0]                                   # (Lk, d_model)
        v = v_ref[0]
        ks_ref[...] = jnp.dot(k, wk_ref[...],
                              preferred_element_type=jnp.float32
                              ).astype(ks_ref.dtype)
        vs_ref[...] = jnp.dot(v, wv_ref[...],
                              preferred_element_type=jnp.float32
                              ).astype(vs_ref.dtype)

    q = q_ref[0]                                       # (tq, d_model) bf16
    # 1/sqrt(d_k) already folded into wq on the host.
    q_s = jnp.dot(q, wq_ref[...], preferred_element_type=jnp.float32)  # (tq, H*d_k) f32

    for h in range(n_heads):                           # static, unrolled head loop
        q_h = q_s[:, h * d_k:(h + 1) * d_k].astype(jnp.bfloat16)   # (tq, d_k)
        k_h = ks_ref[:, h * d_k:(h + 1) * d_k]                     # (Lk, d_k) bf16
        v_h = vs_ref[:, h * d_v:(h + 1) * d_v]                     # (Lk, d_v) bf16

        # Contract trailing dims directly (no explicit XLU transpose of k_h).
        scores = lax.dot_general(
            q_h, k_h,
            dimension_numbers=(((1,), (1,)), ((), ())),
            preferred_element_type=jnp.float32)                    # (tq, Lk) f32

        m = jnp.max(scores, axis=-1, keepdims=True)
        e = jnp.exp(scores - m)
        denom = jnp.sum(e, axis=-1, keepdims=True)
        attn = e * pl.reciprocal(denom, approx=True)               # (tq, Lk) f32

        attn_ref[h, 0] = attn
        out_ref[0, :, h * d_v:(h + 1) * d_v] = jnp.dot(
            attn.astype(jnp.bfloat16), v_h,
            preferred_element_type=jnp.float32).astype(out_ref.dtype)


def _vmem_capacity_bytes():
    try:
        info = pltpu.get_tpu_info()
        cap = getattr(info, "vmem_capacity_bytes", None)
        if cap:
            return int(cap)
    except Exception:
        pass
    return 64 << 20       # conservative fallback (v7x per-TC VMEM)


def _pick_tq(lq, lk, n_heads, d_model, d_k, d_v, vmem_cap):
    """VMEM-aware q-tile size: budget double-buffered blocks + scratch + temps."""
    budget = int(0.7 * vmem_cap)
    fixed = (2 * 2 * lk * d_model * 2                       # k, v blocks (x2 buf, bf16)
             + 2 * d_model * n_heads * (2 * d_k + d_v) * 2  # fused weights (x2 buf, bf16)
             + lk * n_heads * (d_k + d_v) * 2)              # ks/vs scratch (bf16)
    avail = max(budget - fixed, 1 << 20)
    per_row = (2 * d_model * 2                # q block (x2 buf, bf16)
               + 2 * n_heads * lk * 4         # attn out block (x2 buf, f32)
               + 2 * n_heads * d_v * 4        # out block (x2 buf, f32)
               + 2 * lk * 4                   # scores/exp temporaries (one head live)
               + n_heads * d_k * 4)           # q_s
    cap_rows = max(avail // per_row, 8)
    for cand in (512, 256, 128):
        if lq % cand == 0 and cand <= cap_rows:
            return cand
    # TODO(synk): pad Lq when it is large and not a multiple of 128; this
    # single-tile fallback can exceed VMEM for oddly-shaped long sequences.
    return lq


def multi_head_attention(q, k, v, w_q, w_k, w_v):
    """q,k,v: (B, L, d_model) f32.  w_*: (H, d_model, d).  Returns
    (tuple of H arrays (B, Lq, d_v), attn (H*B, Lq, Lk)) - both f32."""
    B, Lq, d_model = q.shape
    Lk = k.shape[1]
    H, _, d_k = w_q.shape
    d_v = w_v.shape[2]

    inv_scale = float(1.0 / np.sqrt(d_k))

    # bf16 operands for the MXU; accumulation stays f32 inside the kernel.
    qb = q.astype(jnp.bfloat16)
    kb = k.astype(jnp.bfloat16)
    vb = v.astype(jnp.bfloat16)

    # Fuse heads into the lane dimension (head-major column order); fold the
    # 1/sqrt(d_k) scale into w_q in f32 before the bf16 cast.
    wq_f = (jnp.transpose(w_q, (1, 0, 2)).reshape(d_model, H * d_k)
            * inv_scale).astype(jnp.bfloat16)
    wk_f = jnp.transpose(w_k, (1, 0, 2)).reshape(d_model, H * d_k).astype(jnp.bfloat16)
    wv_f = jnp.transpose(w_v, (1, 0, 2)).reshape(d_model, H * d_v).astype(jnp.bfloat16)

    vmem_cap = _vmem_capacity_bytes()
    tq = _pick_tq(Lq, Lk, H, d_model, d_k, d_v, vmem_cap)
    n_qt = Lq // tq

    # Explicit scoped-VMEM limit (estimated usage with headroom), so large tiles
    # still compile under v5e's 16 MiB default scoped limit.
    est = (2 * tq * d_model * 2                       # q block
           + 2 * 2 * Lk * d_model * 2                 # k, v blocks
           + 2 * d_model * H * (2 * d_k + d_v) * 2    # weights
           + Lk * H * (d_k + d_v) * 2                 # ks/vs scratch
           + 2 * H * tq * Lk * 4                      # attn out block
           + 2 * tq * H * d_v * 4                     # out block
           + 4 * tq * Lk * 4                          # softmax temporaries
           + tq * H * d_k * 4)                        # q_s
    vmem_limit = int(min(max(2 * est, 32 << 20), int(0.9 * vmem_cap)))

    kernel = functools.partial(_mha_kernel, n_heads=H, d_k=d_k, d_v=d_v)

    flops = 2 * B * (Lq * d_model * H * d_k                 # Q projection
                     + Lk * d_model * H * (d_k + d_v)       # K/V projection (once per batch)
                     + H * Lq * Lk * (d_k + d_v))           # scores + attn@V
    bytes_accessed = (2 * (B * Lq * d_model + 2 * B * Lk * d_model
                           + d_model * H * (2 * d_k + d_v))          # bf16 reads
                      + 4 * (B * Lq * H * d_v + H * B * Lq * Lk))    # f32 writes

    out, attn = pl.pallas_call(
        kernel,
        grid=(B, n_qt),
        in_specs=[
            pl.BlockSpec((1, tq, d_model), lambda b, i: (b, i, 0)),       # q
            pl.BlockSpec((1, Lk, d_model), lambda b, i: (b, 0, 0)),       # k (per batch)
            pl.BlockSpec((1, Lk, d_model), lambda b, i: (b, 0, 0)),       # v (per batch)
            pl.BlockSpec((d_model, H * d_k), lambda b, i: (0, 0)),        # w_q fused (scaled)
            pl.BlockSpec((d_model, H * d_k), lambda b, i: (0, 0)),        # w_k fused
            pl.BlockSpec((d_model, H * d_v), lambda b, i: (0, 0)),        # w_v fused
        ],
        out_specs=[
            pl.BlockSpec((1, tq, H * d_v), lambda b, i: (b, i, 0)),       # outputs
            pl.BlockSpec((H, 1, tq, Lk), lambda b, i: (0, b, i, 0)),      # attn
        ],
        out_shape=(
            jax.ShapeDtypeStruct((B, Lq, H * d_v), jnp.float32),
            jax.ShapeDtypeStruct((H, B, Lq, Lk), jnp.float32),
        ),
        scratch_shapes=[
            pltpu.VMEM((Lk, H * d_k), jnp.bfloat16),    # cached k_s for current batch
            pltpu.VMEM((Lk, H * d_v), jnp.bfloat16),    # cached v_s for current batch
        ],
        compiler_params=pltpu.CompilerParams(
            dimension_semantics=("parallel", "arbitrary"),
            vmem_limit_bytes=vmem_limit),
        cost_estimate=pl.CostEstimate(
            flops=flops,
            transcendentals=H * B * Lq * Lk,
            bytes_accessed=bytes_accessed),
    )(qb, kb, vb, wq_f, wk_f, wv_f)

    # PyTorch: outputs are (H*B, Lq, d_v) head-major, torch.split(b_size, dim=0)
    # -> tuple of H chunks of shape (B, Lq, d_v).
    outputs_split = tuple(out[:, :, h * d_v:(h + 1) * d_v] for h in range(H))
    attn_flat = attn.reshape(H * B, Lq, Lk)     # head-major flattening, no copy
    return outputs_split, attn_flat


def _reference(q, k, v, w_q, w_k, w_v):
    """Pure-JAX f32 reference mirroring the PyTorch forward (no mask, no dropout)."""
    H, d_model, d_k = w_q.shape
    q_s = jnp.einsum("bld,hdk->hblk", q, w_q)   # (H, B, Lq, d_k)
    k_s = jnp.einsum("bld,hdk->hblk", k, w_k)
    v_s = jnp.einsum("bld,hdk->hblk", v, w_v)
    scores = jnp.einsum("hbqk,hbsk->hbqs", q_s, k_s) / np.sqrt(d_k)
    attn = jax.nn.softmax(scores, axis=-1)
    out = jnp.einsum("hbqs,hbsv->hbqv", attn, v_s)
    return out, attn.reshape(-1, attn.shape[-2], attn.shape[-1])


def _xavier_normal(key, shape):
    # torch.nn.init.xavier_normal on a 3D tensor (H, d_model, d):
    # fan_in = d_model * d, fan_out = H * d
    H, d_model, d = shape
    fan_in = d_model * d
    fan_out = H * d
    std = np.sqrt(2.0 / (fan_in + fan_out))
    return std * jax.random.normal(key, shape, dtype=jnp.float32)


if __name__ == "__main__":
    # Small, module-consistent shapes.
    d_model, d_k, d_v, n_heads = 32, 8, 8, 4
    B, L = 2, 8

    root = jax.random.PRNGKey(0)
    kq, kk, kv, kwq, kwk, kwv = jax.random.split(root, 6)

    q = jax.random.normal(kq, (B, L, d_model), dtype=jnp.float32)
    k = jax.random.normal(kk, (B, L, d_model), dtype=jnp.float32)
    v = jax.random.normal(kv, (B, L, d_model), dtype=jnp.float32)

    w_q = _xavier_normal(kwq, (n_heads, d_model, d_k))
    w_k = _xavier_normal(kwk, (n_heads, d_model, d_k))
    w_v = _xavier_normal(kwv, (n_heads, d_model, d_v))

    outputs_split, attn = multi_head_attention(q, k, v, w_q, w_k, w_v)
    jax.block_until_ready(attn)
    for o in outputs_split:
        jax.block_until_ready(o)

    # Correctness check vs. pure-JAX f32 reference.  Tolerance is 2e-2 because
    # the kernel runs the MXU matmuls with bf16 operands (f32 accumulation) and
    # uses the EUP approx reciprocal for the softmax denominator.
    ref_out, ref_attn = _reference(q, k, v, w_q, w_k, w_v)
    for h in range(n_heads):
        np.testing.assert_allclose(np.asarray(outputs_split[h]),
                                   np.asarray(ref_out[h]), rtol=2e-2, atol=2e-2)
    np.testing.assert_allclose(np.asarray(attn), np.asarray(ref_attn),
                               rtol=2e-2, atol=2e-2)

    print("KERNEL_OK")
</pallas_src>

<mosaic_0001>
module attributes {stable_mosaic.version = 11 : i64} {
  func.func @_mha_kernel(%arg0: i32, %arg1: i32, %arg2: memref<1x8x32xbf16, #tpu.memory_space<vmem>>, %arg3: memref<1x8x32xbf16, #tpu.memory_space<vmem>>, %arg4: memref<1x8x32xbf16, #tpu.memory_space<vmem>>, %arg5: memref<32x32xbf16, #tpu.memory_space<vmem>>, %arg6: memref<32x32xbf16, #tpu.memory_space<vmem>>, %arg7: memref<32x32xbf16, #tpu.memory_space<vmem>>, %arg8: memref<1x8x32xf32, #tpu.memory_space<vmem>>, %arg9: memref<4x1x8x8xf32, #tpu.memory_space<vmem>>, %arg10: memref<8x32xbf16, #tpu.memory_space<vmem>>, %arg11: memref<8x32xbf16, #tpu.memory_space<vmem>>) attributes {dimension_semantics = [#tpu.dimension_semantics<parallel>, #tpu.dimension_semantics<arbitrary>], iteration_bounds = array<i64: 2, 1>, scalar_prefetch = 0 : i64, scratch_operands = 2 : i64, tpu.core_type = #tpu.core_type<tc>, window_params = [{transform_indices = @transform_0, window_bounds = array<i64: 1, 8, 32>}, {transform_indices = @transform_1, window_bounds = array<i64: 1, 8, 32>}, {transform_indices = @transform_2, window_bounds = array<i64: 1, 8, 32>}, {pipeline_mode = #tpu.pipeline_mode<synchronous>, transform_indices = @transform_3, window_bounds = array<i64: 32, 32>}, {pipeline_mode = #tpu.pipeline_mode<synchronous>, transform_indices = @transform_4, window_bounds = array<i64: 32, 32>}, {pipeline_mode = #tpu.pipeline_mode<synchronous>, transform_indices = @transform_5, window_bounds = array<i64: 32, 32>}, {transform_indices = @transform_6, window_bounds = array<i64: 1, 8, 32>}, {transform_indices = @transform_7, window_bounds = array<i64: 4, 1, 8, 8>}]} {
    %c0_i32 = arith.constant 0 : i32
    %0 = arith.cmpi eq, %arg1, %c0_i32 : i32
    %1 = arith.extui %0 : i1 to i32
    %c0_i32_0 = arith.constant 0 : i32
    %2 = arith.cmpi ne, %1, %c0_i32_0 : i32
    scf.if %2 {
      %c0_59 = arith.constant 0 : index
      %c0_60 = arith.constant 0 : index
      %c0_61 = arith.constant 0 : index
      %99 = vector.load %arg3[%c0_59, %c0_60, %c0_61] : memref<1x8x32xbf16, #tpu.memory_space<vmem>>, vector<1x8x32xbf16>
      %100 = vector.shape_cast %99 : vector<1x8x32xbf16> to vector<8x32xbf16>
      %c0_62 = arith.constant 0 : index
      %c0_63 = arith.constant 0 : index
      %c0_64 = arith.constant 0 : index
      %101 = vector.load %arg4[%c0_62, %c0_63, %c0_64] : memref<1x8x32xbf16, #tpu.memory_space<vmem>>, vector<1x8x32xbf16>
      %102 = vector.shape_cast %101 : vector<1x8x32xbf16> to vector<8x32xbf16>
      %c0_65 = arith.constant 0 : index
      %c0_66 = arith.constant 0 : index
      %103 = vector.load %arg6[%c0_65, %c0_66] : memref<32x32xbf16, #tpu.memory_space<vmem>>, vector<32x32xbf16>
      %cst_67 = arith.constant dense<0.000000e+00> : vector<8x32xf32>
      %104 = tpu.matmul %100, %103, %cst_67 {dimension_numbers = #tpu.dot_dimension_numbers<[1], [0], [0], [1], [0, 0, 1, 1], [], []>} : vector<8x32xbf16>, vector<32x32xbf16>, vector<8x32xf32> -> vector<8x32xf32>
      %105 = arith.truncf %104 : vector<8x32xf32> to vector<8x32xbf16>
      %c0_68 = arith.constant 0 : index
      %c0_69 = arith.constant 0 : index
      %106 = vector.load %arg10[%c0_68, %c0_69] : memref<8x32xbf16, #tpu.memory_space<vmem>>, vector<8x32xbf16>
      tpu.vector_store %arg10[%c0_68, %c0_69], %105 {strides = array<i32>} : memref<8x32xbf16, #tpu.memory_space<vmem>>, vector<8x32xbf16>,
      %c0_70 = arith.constant 0 : index
      %c0_71 = arith.constant 0 : index
      %107 = vector.load %arg7[%c0_70, %c0_71] : memref<32x32xbf16, #tpu.memory_space<vmem>>, vector<32x32xbf16>
      %cst_72 = arith.constant dense<0.000000e+00> : vector<8x32xf32>
      %108 = tpu.matmul %102, %107, %cst_72 {dimension_numbers = #tpu.dot_dimension_numbers<[1], [0], [0], [1], [0, 0, 1, 1], [], []>} : vector<8x32xbf16>, vector<32x32xbf16>, vector<8x32xf32> -> vector<8x32xf32>
      %109 = arith.truncf %108 : vector<8x32xf32> to vector<8x32xbf16>
      %c0_73 = arith.constant 0 : index
      %c0_74 = arith.constant 0 : index
      %110 = vector.load %arg11[%c0_73, %c0_74] : memref<8x32xbf16, #tpu.memory_space<vmem>>, vector<8x32xbf16>
      tpu.vector_store %arg11[%c0_73, %c0_74], %109 {strides = array<i32>} : memref<8x32xbf16, #tpu.memory_space<vmem>>, vector<8x32xbf16>,
    } else {
    }
    %c0 = arith.constant 0 : index
    %c0_1 = arith.constant 0 : index
    %c0_2 = arith.constant 0 : index
    %3 = vector.load %arg2[%c0, %c0_1, %c0_2] : memref<1x8x32xbf16, #tpu.memory_space<vmem>>, vector<1x8x32xbf16>
    %4 = vector.shape_cast %3 : vector<1x8x32xbf16> to vector<8x32xbf16>
    %c0_3 = arith.constant 0 : index
    %c0_4 = arith.constant 0 : index
    %5 = vector.load %arg5[%c0_3, %c0_4] : memref<32x32xbf16, #tpu.memory_space<vmem>>, vector<32x32xbf16>
    %cst = arith.constant dense<0.000000e+00> : vector<8x32xf32>
    %6 = tpu.matmul %4, %5, %cst {dimension_numbers = #tpu.dot_dimension_numbers<[1], [0], [0], [1], [0, 0, 1, 1], [], []>} : vector<8x32xbf16>, vector<32x32xbf16>, vector<8x32xf32> -> vector<8x32xf32>
    %7 = vector.extract_strided_slice %6 {offsets = [0, 0], sizes = [8, 8], strides = [1, 1]} : vector<8x32xf32> to vector<8x8xf32>
    %8 = arith.truncf %7 : vector<8x8xf32> to vector<8x8xbf16>
    %c0_5 = arith.constant 0 : index
    %c0_6 = arith.constant 0 : index
    %9 = vector.load %arg10[%c0_5, %c0_6] : memref<8x32xbf16, #tpu.memory_space<vmem>>, vector<8x8xbf16>
    %c0_7 = arith.constant 0 : index
    %c0_8 = arith.constant 0 : index
    %10 = vector.load %arg11[%c0_7, %c0_8] : memref<8x32xbf16, #tpu.memory_space<vmem>>, vector<8x8xbf16>
    %cst_9 = arith.constant dense<0.000000e+00> : vector<8x8xf32>
    %11 = tpu.matmul %8, %9, %cst_9 {dimension_numbers = #tpu.dot_dimension_numbers<[1], [1], [0], [0], [0, 0, 1, 0], [], []>} : vector<8x8xbf16>, vector<8x8xbf16>, vector<8x8xf32> -> vector<8x8xf32>
    %cst_10 = arith.constant dense<0xFF800000> : vector<8xf32>
    %12 = vector.multi_reduction <maximumf>, %11, %cst_10 [1] : vector<8x8xf32> to vector<8xf32>
    %13 = vector.shape_cast %12 : vector<8xf32> to vector<8x1xf32>
    %14 = vector.broadcast %13 : vector<8x1xf32> to vector<8x8xf32>
    %15 = arith.subf %11, %14 : vector<8x8xf32>
    %16 = math.exp %15 : vector<8x8xf32>
    %cst_11 = arith.constant dense<0.000000e+00> : vector<8xf32>
    %17 = vector.multi_reduction <add>, %16, %cst_11 [1] : vector<8x8xf32> to vector<8xf32>
    %18 = vector.shape_cast %17 : vector<8xf32> to vector<8x1xf32>
    %19 = tpu.reciprocal %18 {approx = true} : vector<8x1xf32> -> vector<8x1xf32>
    %20 = vector.broadcast %19 : vector<8x1xf32> to vector<8x8xf32>
    %21 = arith.mulf %16, %20 : vector<8x8xf32>
    %c0_12 = arith.constant 0 : index
    %c0_13 = arith.constant 0 : index
    %c0_14 = arith.constant 0 : index
    %c0_15 = arith.constant 0 : index
    %22 = vector.load %arg9[%c0_12, %c0_13, %c0_14, %c0_15] : memref<4x1x8x8xf32, #tpu.memory_space<vmem>>, vector<1x1x8x8xf32>
    %23 = vector.shape_cast %22 : vector<1x1x8x8xf32> to vector<8x8xf32>
    %24 = vector.shape_cast %21 : vector<8x8xf32> to vector<1x1x8x8xf32>
    tpu.vector_store %arg9[%c0_12, %c0_13, %c0_14, %c0_15], %24 {strides = array<i32>} : memref<4x1x8x8xf32, #tpu.memory_space<vmem>>, vector<1x1x8x8xf32>,
    %25 = arith.truncf %21 : vector<8x8xf32> to vector<8x8xbf16>
    %cst_16 = arith.constant dense<0.000000e+00> : vector<8x8xf32>
    %26 = tpu.matmul %25, %10, %cst_16 {dimension_numbers = #tpu.dot_dimension_numbers<[1], [0], [0], [1], [0, 0, 1, 1], [], []>} : vector<8x8xbf16>, vector<8x8xbf16>, vector<8x8xf32> -> vector<8x8xf32>
    %c0_17 = arith.constant 0 : index
    %c0_18 = arith.constant 0 : index
    %c0_19 = arith.constant 0 : index
    %27 = vector.load %arg8[%c0_17, %c0_18, %c0_19] : memref<1x8x32xf32, #tpu.memory_space<vmem>>, vector<1x8x8xf32>
    %28 = vector.shape_cast %27 : vector<1x8x8xf32> to vector<8x8xf32>
    %29 = vector.shape_cast %26 : vector<8x8xf32> to vector<1x8x8xf32>
    tpu.vector_store %arg8[%c0_17, %c0_18, %c0_19], %29 {strides = array<i32>} : memref<1x8x32xf32, #tpu.memory_space<vmem>>, vector<1x8x8xf32>,
    %30 = vector.extract_strided_slice %6 {offsets = [0, 8], sizes = [8, 8], strides = [1, 1]} : vector<8x32xf32> to vector<8x8xf32>
    %31 = arith.truncf %30 : vector<8x8xf32> to vector<8x8xbf16>
    %c0_20 = arith.constant 0 : index
    %c8 = arith.constant 8 : index
    %32 = vector.load %arg10[%c0_20, %c8] : memref<8x32xbf16, #tpu.memory_space<vmem>>, vector<8x8xbf16>
    %c0_21 = arith.constant 0 : index
    %c8_22 = arith.constant 8 : index
    %33 = vector.load %arg11[%c0_21, %c8_22] : memref<8x32xbf16, #tpu.memory_space<vmem>>, vector<8x8xbf16>
    %cst_23 = arith.constant dense<0.000000e+00> : vector<8x8xf32>
    %34 = tpu.matmul %31, %32, %cst_23 {dimension_numbers = #tpu.dot_dimension_numbers<[1], [1], [0], [0], [0, 0, 1, 0], [], []>} : vector<8x8xbf16>, vector<8x8xbf16>, vector<8x8xf32> -> vector<8x8xf32>
    %cst_24 = arith.constant dense<0xFF800000> : vector<8xf32>
    %35 = vector.multi_reduction <maximumf>, %34, %cst_24 [1] : vector<8x8xf32> to vector<8xf32>
    %36 = vector.shape_cast %35 : vector<8xf32> to vector<8x1xf32>
    %37 = vector.broadcast %36 : vector<8x1xf32> to vector<8x8xf32>
    %38 = arith.subf %34, %37 : vector<8x8xf32>
    %39 = math.exp %38 : vector<8x8xf32>
    %cst_25 = arith.constant dense<0.000000e+00> : vector<8xf32>
    %40 = vector.multi_reduction <add>, %39, %cst_25 [1] : vector<8x8xf32> to vector<8xf32>
    %41 = vector.shape_cast %40 : vector<8xf32> to vector<8x1xf32>
    %42 = tpu.reciprocal %41 {approx = true} : vector<8x1xf32> -> vector<8x1xf32>
    %43 = vector.broadcast %42 : vector<8x1xf32> to vector<8x8xf32>
    %44 = arith.mulf %39, %43 : vector<8x8xf32>
    %c1 = arith.constant 1 : index
    %c0_26 = arith.constant 0 : index
    %c0_27 = arith.constant 0 : index
    %c0_28 = arith.constant 0 : index
    %45 = vector.load %arg9[%c1, %c0_26, %c0_27, %c0_28] : memref<4x1x8x8xf32, #tpu.memory_space<vmem>>, vector<1x1x8x8xf32>
    %46 = vector.shape_cast %45 : vector<1x1x8x8xf32> to vector<8x8xf32>
    %47 = vector.shape_cast %44 : vector<8x8xf32> to vector<1x1x8x8xf32>
    tpu.vector_store %arg9[%c1, %c0_26, %c0_27, %c0_28], %47 {strides = array<i32>} : memref<4x1x8x8xf32, #tpu.memory_space<vmem>>, vector<1x1x8x8xf32>,
    %48 = arith.truncf %44 : vector<8x8xf32> to vector<8x8xbf16>
    %cst_29 = arith.constant dense<0.000000e+00> : vector<8x8xf32>
    %49 = tpu.matmul %48, %33, %cst_29 {dimension_numbers = #tpu.dot_dimension_numbers<[1], [0], [0], [1], [0, 0, 1, 1], [], []>} : vector<8x8xbf16>, vector<8x8xbf16>, vector<8x8xf32> -> vector<8x8xf32>
    %c0_30 = arith.constant 0 : index
    %c0_31 = arith.constant 0 : index
    %c8_32 = arith.constant 8 : index
    %50 = vector.load %arg8[%c0_30, %c0_31, %c8_32] : memref<1x8x32xf32, #tpu.memory_space<vmem>>, vector<1x8x8xf32>
    %51 = vector.shape_cast %50 : vector<1x8x8xf32> to vector<8x8xf32>
    %52 = vector.shape_cast %49 : vector<8x8xf32> to vector<1x8x8xf32>
    tpu.vector_store %arg8[%c0_30, %c0_31, %c8_32], %52 {strides = array<i32>} : memref<1x8x32xf32, #tpu.memory_space<vmem>>, vector<1x8x8xf32>,
    %53 = vector.extract_strided_slice %6 {offsets = [0, 16], sizes = [8, 8], strides = [1, 1]} : vector<8x32xf32> to vector<8x8xf32>
    %54 = arith.truncf %53 : vector<8x8xf32> to vector<8x8xbf16>
    %c0_33 = arith.constant 0 : index
    %c16 = arith.constant 16 : index
    %55 = vector.load %arg10[%c0_33, %c16] : memref<8x32xbf16, #tpu.memory_space<vmem>>, vector<8x8xbf16>
    %c0_34 = arith.constant 0 : index
    %c16_35 = arith.constant 16 : index
    %56 = vector.load %arg11[%c0_34, %c16_35] : memref<8x32xbf16, #tpu.memory_space<vmem>>, vector<8x8xbf16>
    %cst_36 = arith.constant dense<0.000000e+00> : vector<8x8xf32>
    %57 = tpu.matmul %54, %55, %cst_36 {dimension_numbers = #tpu.dot_dimension_numbers<[1], [1], [0], [0], [0, 0, 1, 0], [], []>} : vector<8x8xbf16>, vector<8x8xbf16>, vector<8x8xf32> -> vector<8x8xf32>
    %cst_37 = arith.constant dense<0xFF800000> : vector<8xf32>
    %58 = vector.multi_reduction <maximumf>, %57, %cst_37 [1] : vector<8x8xf32> to vector<8xf32>
    %59 = vector.shape_cast %58 : vector<8xf32> to vector<8x1xf32>
    %60 = vector.broadcast %59 : vector<8x1xf32> to vector<8x8xf32>
    %61 = arith.subf %57, %60 : vector<8x8xf32>
    %62 = math.exp %61 : vector<8x8xf32>
    %cst_38 = arith.constant dense<0.000000e+00> : vector<8xf32>
    %63 = vector.multi_reduction <add>, %62, %cst_38 [1] : vector<8x8xf32> to vector<8xf32>
    %64 = vector.shape_cast %63 : vector<8xf32> to vector<8x1xf32>
    %65 = tpu.reciprocal %64 {approx = true} : vector<8x1xf32> -> vector<8x1xf32>
    %66 = vector.broadcast %65 : vector<8x1xf32> to vector<8x8xf32>
    %67 = arith.mulf %62, %66 : vector<8x8xf32>
    %c2 = arith.constant 2 : index
    %c0_39 = arith.constant 0 : index
    %c0_40 = arith.constant 0 : index
    %c0_41 = arith.constant 0 : index
    %68 = vector.load %arg9[%c2, %c0_39, %c0_40, %c0_41] : memref<4x1x8x8xf32, #tpu.memory_space<vmem>>, vector<1x1x8x8xf32>
    %69 = vector.shape_cast %68 : vector<1x1x8x8xf32> to vector<8x8xf32>
    %70 = vector.shape_cast %67 : vector<8x8xf32> to vector<1x1x8x8xf32>
    tpu.vector_store %arg9[%c2, %c0_39, %c0_40, %c0_41], %70 {strides = array<i32>} : memref<4x1x8x8xf32, #tpu.memory_space<vmem>>, vector<1x1x8x8xf32>,
    %71 = arith.truncf %67 : vector<8x8xf32> to vector<8x8xbf16>
    %cst_42 = arith.constant dense<0.000000e+00> : vector<8x8xf32>
    %72 = tpu.matmul %71, %56, %cst_42 {dimension_numbers = #tpu.dot_dimension_numbers<[1], [0], [0], [1], [0, 0, 1, 1], [], []>} : vector<8x8xbf16>, vector<8x8xbf16>, vector<8x8xf32> -> vector<8x8xf32>
    %c0_43 = arith.constant 0 : index
    %c0_44 = arith.constant 0 : index
    %c16_45 = arith.constant 16 : index
    %73 = vector.load %arg8[%c0_43, %c0_44, %c16_45] : memref<1x8x32xf32, #tpu.memory_space<vmem>>, vector<1x8x8xf32>
    %74 = vector.shape_cast %73 : vector<1x8x8xf32> to vector<8x8xf32>
    %75 = vector.shape_cast %72 : vector<8x8xf32> to vector<1x8x8xf32>
    tpu.vector_store %arg8[%c0_43, %c0_44, %c16_45], %75 {strides = array<i32>} : memref<1x8x32xf32, #tpu.memory_space<vmem>>, vector<1x8x8xf32>,
    %76 = vector.extract_strided_slice %6 {offsets = [0, 24], sizes = [8, 8], strides = [1, 1]} : vector<8x32xf32> to vector<8x8xf32>
    %77 = arith.truncf %76 : vector<8x8xf32> to vector<8x8xbf16>
    %c0_46 = arith.constant 0 : index
    %c24 = arith.constant 24 : index
    %78 = vector.load %arg10[%c0_46, %c24] : memref<8x32xbf16, #tpu.memory_space<vmem>>, vector<8x8xbf16>
    %c0_47 = arith.constant 0 : index
    %c24_48 = arith.constant 24 : index
    %79 = vector.load %arg11[%c0_47, %c24_48] : memref<8x32xbf16, #tpu.memory_space<vmem>>, vector<8x8xbf16>
    %cst_49 = arith.constant dense<0.000000e+00> : vector<8x8xf32>
    %80 = tpu.matmul %77, %78, %cst_49 {dimension_numbers = #tpu.dot_dimension_numbers<[1], [1], [0], [0], [0, 0, 1, 0], [], []>} : vector<8x8xbf16>, vector<8x8xbf16>, vector<8x8xf32> -> vector<8x8xf32>
    %cst_50 = arith.constant dense<0xFF800000> : vector<8xf32>
    %81 = vector.multi_reduction <maximumf>, %80, %cst_50 [1] : vector<8x8xf32> to vector<8xf32>
    %82 = vector.shape_cast %81 : vector<8xf32> to vector<8x1xf32>
    %83 = vector.broadcast %82 : vector<8x1xf32> to vector<8x8xf32>
    %84 = arith.subf %80, %83 : vector<8x8xf32>
    %85 = math.exp %84 : vector<8x8xf32>
    %cst_51 = arith.constant dense<0.000000e+00> : vector<8xf32>
    %86 = vector.multi_reduction <add>, %85, %cst_51 [1] : vector<8x8xf32> to vector<8xf32>
    %87 = vector.shape_cast %86 : vector<8xf32> to vector<8x1xf32>
    %88 = tpu.reciprocal %87 {approx = true} : vector<8x1xf32> -> vector<8x1xf32>
    %89 = vector.broadcast %88 : vector<8x1xf32> to vector<8x8xf32>
    %90 = arith.mulf %85, %89 : vector<8x8xf32>
    %c3 = arith.constant 3 : index
    %c0_52 = arith.constant 0 : index
    %c0_53 = arith.constant 0 : index
    %c0_54 = arith.constant 0 : index
    %91 = vector.load %arg9[%c3, %c0_52, %c0_53, %c0_54] : memref<4x1x8x8xf32, #tpu.memory_space<vmem>>, vector<1x1x8x8xf32>
    %92 = vector.shape_cast %91 : vector<1x1x8x8xf32> to vector<8x8xf32>
    %93 = vector.shape_cast %90 : vector<8x8xf32> to vector<1x1x8x8xf32>
    tpu.vector_store %arg9[%c3, %c0_52, %c0_53, %c0_54], %93 {strides = array<i32>} : memref<4x1x8x8xf32, #tpu.memory_space<vmem>>, vector<1x1x8x8xf32>,
    %94 = arith.truncf %90 : vector<8x8xf32> to vector<8x8xbf16>
    %cst_55 = arith.constant dense<0.000000e+00> : vector<8x8xf32>
    %95 = tpu.matmul %94, %79, %cst_55 {dimension_numbers = #tpu.dot_dimension_numbers<[1], [0], [0], [1], [0, 0, 1, 1], [], []>} : vector<8x8xbf16>, vector<8x8xbf16>, vector<8x8xf32> -> vector<8x8xf32>
    %c0_56 = arith.constant 0 : index
    %c0_57 = arith.constant 0 : index
    %c24_58 = arith.constant 24 : index
    %96 = vector.load %arg8[%c0_56, %c0_57, %c24_58] : memref<1x8x32xf32, #tpu.memory_space<vmem>>, vector<1x8x8xf32>
    %97 = vector.shape_cast %96 : vector<1x8x8xf32> to vector<8x8xf32>
    %98 = vector.shape_cast %95 : vector<8x8xf32> to vector<1x8x8xf32>
    tpu.vector_store %arg8[%c0_56, %c0_57, %c24_58], %98 {strides = array<i32>} : memref<1x8x32xf32, #tpu.memory_space<vmem>>, vector<1x8x8xf32>,
    return
  }
  func.func @transform_0(%arg0: i32, %arg1: i32) -> (i32, i32, i32) {
    %c0_i32 = arith.constant 0 : i32
    %c0_i32_0 = arith.constant 0 : i32
    return %arg0, %arg1, %c0_i32 : i32, i32, i32
  }
  func.func @transform_1(%arg0: i32, %arg1: i32) -> (i32, i32, i32) {
    %c0_i32 = arith.constant 0 : i32
    %c0_i32_0 = arith.constant 0 : i32
    %c0_i32_1 = arith.constant 0 : i32
    return %arg0, %c0_i32, %c0_i32_0 : i32, i32, i32
  }
  func.func @transform_2(%arg0: i32, %arg1: i32) -> (i32, i32, i32) {
    %c0_i32 = arith.constant 0 : i32
    %c0_i32_0 = arith.constant 0 : i32
    %c0_i32_1 = arith.constant 0 : i32
    return %arg0, %c0_i32, %c0_i32_0 : i32, i32, i32
  }
  func.func @transform_3(%arg0: i32, %arg1: i32) -> (i32, i32) {
    %c0_i32 = arith.constant 0 : i32
    %c0_i32_0 = arith.constant 0 : i32
    %c0_i32_1 = arith.constant 0 : i32
    return %c0_i32, %c0_i32_0 : i32, i32
  }
  func.func @transform_4(%arg0: i32, %arg1: i32) -> (i32, i32) {
    %c0_i32 = arith.constant 0 : i32
    %c0_i32_0 = arith.constant 0 : i32
    %c0_i32_1 = arith.constant 0 : i32
    return %c0_i32, %c0_i32_0 : i32, i32
  }
  func.func @transform_5(%arg0: i32, %arg1: i32) -> (i32, i32) {
    %c0_i32 = arith.constant 0 : i32
    %c0_i32_0 = arith.constant 0 : i32
    %c0_i32_1 = arith.constant 0 : i32
    return %c0_i32, %c0_i32_0 : i32, i32
  }
  func.func @transform_6(%arg0: i32, %arg1: i32) -> (i32, i32, i32) {
    %c0_i32 = arith.constant 0 : i32
    %c0_i32_0 = arith.constant 0 : i32
    return %arg0, %arg1, %c0_i32 : i32, i32, i32
  }
  func.func @transform_7(%arg0: i32, %arg1: i32) -> (i32, i32, i32, i32) {
    %c0_i32 = arith.constant 0 : i32
    %c0_i32_0 = arith.constant 0 : i32
    %c0_i32_1 = arith.constant 0 : i32
    return %c0_i32, %arg0, %arg1, %c0_i32_0 : i32, i32, i32, i32
  }
}

</mosaic_0001>

<bundles_post_ra>
// kernel: tpu_custom_call.1
= control target key start
LH: loop header
LB: loop body
LE: loop exit
PB: predicated region body
PF: predicated region fallthrough
CT: control target
= control target key end

     0   :  { %s2395_s0 = inlined_call_operand.hbm [shape: bf16[2,8,32], index: 0, kind: input, shape index: {}]   ;;  %s2396_s1 = inlined_call_operand.hbm [shape: bf16[2,8,32], index: 1, kind: input, shape index: {}]   ;;  %s2397_s2 = inlined_call_operand.hbm [shape: bf16[2,8,32], index: 2, kind: input, shape index: {}]   ;;  %s2398_s3 = inlined_call_operand.hbm [shape: bf16[32,32], index: 3, kind: input, shape index: {}]   ;;  %s2399_s4 = inlined_call_operand.hbm [shape: bf16[32,32], index: 4, kind: input, shape index: {}]   ;;  %s2400_s5 = inlined_call_operand.vmem [shape: bf16[32,32], index: 5, kind: input, shape index: {}]   ;;  %s2401_s6 = inlined_call_operand.hbm [shape: f32[2,8,32], index: 6, kind: output, shape index: {0}]   ;;  %s2402_s7 = inlined_call_operand.hbm [shape: f32[4,2,8,8], index: 7, kind: output, shape index: {1}]  }
   0x1   :  { %2422 = sst [smem:[#allocation26_spill]] %s2396_s1 }
   0x2   :  { %2423 = sst [smem:[#allocation27_spill]] %s2398_s3 }
   0x3   :  { %2424 = sst [smem:[#allocation28_spill]] %s2399_s4 }
   0x4   :  { %13 = vsyncpa [#allocation5], 0 }
   0x5   :  { %15 = vsyncpa [#allocation5 + $0x1], 0 }
   0x6   :  { %16 = vsyncpa [#allocation8], 0 }
   0x7   :  { %18 = vsyncpa [#allocation8 + $0x1], 0 }
   0x8   :  { %19 = vsyncpa [#allocation11], 0 }
   0x9   :  { %20 = vsyncpa [#allocation6], 0 }
   0xa   :  { %22 = vsyncpa [#allocation6 + $0x1], 0 }
   0xb   :  { %23 = vsyncpa [#allocation15], 0 }
   0xc   :  { %25 = vsyncpa [#allocation15 + $0x1], 0  ;;  %s1933_s24 = smov 0   ;;  %s1935_s25 = smov 0  }
   0xd   :  { %s1937_s26 = smov 0   ;;  %s1939_s27 = smov 0  }
   0xe   :  { %s1941_s28 = smov 0   ;;  %s1943_s29 = smov 0  }
   0xf LB: > { %2425 = sst [smem:[#allocation21_spill]] %s1868_s28  ;;  %s1964_s30 = sadd.s32 4294967295, %s1872_s29   ;;  %s1872_s29 = sphi %s1943_s29, %s31_s29   ;;  %s1868_s28 = sphi %s1941_s28, %s2461_s28   ;;  %s1864_s27 = sphi %s1939_s27, %s2460_s27   ;;  %s1860_s26 = sphi %s1937_s26, %s2464_s26   ;;  %s1856_s25 = sphi %s1935_s25, %s2463_s25   ;;  %s1852_s24 = sphi %s1933_s24, %s2462_s24  }
  0x10   : > { %2426 = sst [smem:[#allocation22_spill]] %s1872_s29  ;;  %s1318_s8 = sadd.s32 4294967294, %s1872_s29  }
  0x11   : > { %p65_p0 = scmp.ne.s32.totalorder %s1856_s25, %s1852_s24  ;;  %p2403_p1 = scmp.eq.s32.totalorder %s1964_s30, 0 }
  0x12   : > { %p212_p3 = scmp.eq.s32.totalorder %s1318_s8, 1  ;;  %p1319_p5 = scmp.ge.s32.totalorder %s1872_s29, 1 }
  0x13   : > { %p1973_p4 = por %p2403_p1, %p65_p0  ;;  %p247_p7 = scmp.lt.s32.totalorder %s1872_s29, 3 }
  0x14   : > { %p1978_p6 = por %p212_p3, %p65_p0  ;;  %s1874_s12 = smov [#allocation10]  }
  0x15   : > { %s2427_s9 = scalar_select %p1973_p4, 1, 0 }
  0x16   : > { %s2428_s10 = scalar_select %p1978_p6, 1, 0 }
  0x17   : > { %p1983_p8 = pnand %p1319_p5, %p247_p7  ;;  %s259_s13 = sshll.u32 %s1874_s12, 4  ;;  %s260_s13 = int_to_ptr.vmem [resolvable:$true] %s259_s13 }
  0x18   : > { %2429 = sst [smem:[#allocation23_spill]] %s2428_s10  ;;  %s43_s15 = sadd.s32 1, %s1868_s28 }
  0x19   : > { %s2430_s11 = scalar_select %p1983_p8, 1, 0 }
  0x1a   : > { %p1484_p9 = pneg %p1983_p8  ;;  %s2432_s3 = sld [smem:[#allocation27_spill]] }
  0x1c   : > { %p1992_p11 = pnand %p1484_p9, %p2403_p1 }
  0x1e   : > { %s2431_s14 = scalar_select %p1992_p11, 1, 0 }
  0x1f   : > { %p2414_p13 = pneg %p1992_p11 }
  0x20   : > { %s1604_s18 = scalar_lea.hbm %s2432_s3, 256 }
  0x21   : > { %p1605_p12 = scmp.ne.s32.totalorder %s2432_s3, %s1604_s18  ;;  %p1611_p5 = scmp.lt.u32.totalorder %s1604_s18, %s2432_s3 }
  0x23   : > { %p1607_p0 = pnand %p2414_p13, %p1605_p12 }
  0x25   : > { %p1608_p3 = pneg %p1607_p0 }
  0x27   : > { %p1613_p7 = pnand %p1611_p5, %p1608_p3 }
  0x29   : > { %1616 = shalt.err (!%p1613_p7)
}
  0x2a   : > { %s1617_s23 = scalar_lea.vmem %s260_s13, 256  ;;  %p1625_p2 = scmp.lt.s32.totalorder %s260_s13, %s260_s13 }
  0x2b   : > { %p1618_p9 = scmp.ne.s32.totalorder %s260_s13, %s1617_s23  ;;  %p1626_p6 = scmp.lt.s32.totalorder %s1617_s23, %s1617_s23 }
  0x2d   : > { %p1620_p10 = pnand %p1618_p9, %p2414_p13  ;;  %p1627_p4 = por %p1626_p6, %p1625_p2 }
  0x2f   : > { %p1621_p1 = pneg %p1620_p10 }
  0x31   : > { %p1628_p8 = pnand %p1627_p4, %p1621_p1 }
  0x33   : > { %1631 = shalt.err (!%p1628_p8)
}
  0x34   : > { %s2406_s8 = smov 64   ;;  %s2407_s12 = smov 4  }
  0x35   : > { %1487 = dma.hbm_to_vmem [thread:$0]  (!%p1992_p11), %s2432_s3, 256, %s260_s13, [#allocation11], %s2406_s8, %s2406_s8, %s2407_s12  }
  0x36   : > { %p45_p1 = scmp.ge.s32.totalorder %s43_s15, 2  ;;  %s52_s18 = sadd.s32 1, %s1860_s26 }
  0x37   : > { %p59_p2 = scmp.ne.s32.totalorder %s1860_s26, %s1856_s25  ;;  %p60_p4 = scmp.eq.s32.totalorder %s1872_s29, 0 }
  0x38   : > { %s2466_s15 = smov (%p45_p1, %s43_s15), 0  ;;  %p2434_p8 = scmp.eq.s32.totalorder %s1964_s30, 1 }
  0x39   : > { %2433 = sst [smem:[#allocation24_spill]] %s2466_s15  ;;  %p61_p6 = por %p60_p4, %p59_p2 }
  0x3a   : > { %p2030_p10 = por %p2434_p8, %p59_p2  ;;  %s47_s20 = ssub.s32 %s1868_s28, %s2466_s15 }
  0x3b   : > { %p1510_p12 = scmp.lt.s32.totalorder %s1872_s29, 2  ;;  %p50_p0 = scmp.eq.s32.totalorder %s47_s20, 0 }
  0x3c   : > { %s2435_s19 = scalar_select %p2030_p10, 1, 0 }
  0x3d   : > { %s2408_s21 = sand.u32 1, %s1860_s26   ;;  %s2043_s22 = sshll.u32 %s1868_s28, 6 }
  0x3e   : > { %s2040_s13 = sshll.u32 %s2408_s21, 2  ;;  %p2048_p3 = pnand %p1510_p12, %p61_p6 }
  0x3f   : > { %s2046_s23 = scalar_select %p50_p0, %s1860_s26, %s52_s18  }
  0x40   : > { %s2437_s16 = scalar_select %p2048_p3, 1, 0 }
  0x41   : > { %2436 = sst [smem:[#allocation25_spill]] %s2046_s23  ;;  %s308_s17 = sand.u32 1, %s1872_s29  }
  0x42   : > { %s2438_s1 = sld [smem:[#allocation26_spill]]  ;;  %s312_s21 = scalar_lea.vmem [#allocation7], %s2040_s13 }
  0x43   : > { %s319_s3 = sshll.u32 %s312_s21, 4  ;;  %s1877_s18 = smov [#allocation12]   ;;  %s2060_s3 = int_to_ptr.vmem [resolvable:$true] %s319_s3 }
  0x44   : > { %s2062_s15 = sshll.u32 %s1877_s18, 4  ;;  %s2064_s28 = scalar_lea.sflag [#allocation8], %s308_s17  ;;  %s273_s15 = int_to_ptr.vmem [resolvable:$true] %s2062_s15 }
  0x45   : > { %p2070_p7 = pneg %p2048_p3 }
  0x47   : > { %s2439_s8 = scalar_select %p2070_p7, 1, 0 }
  0x48   : > { %s2057_s20 = scalar_lea.hbm %s2438_s1, %s2043_s22  ;;  %s1637_s29 = scalar_lea.hbm %s2438_s1, 128 }
  0x49   : > { %s1632_s23 = scalar_lea.hbm %s2057_s20, 64  ;;  %p1638_p2 = scmp.lt.u32.totalorder %s2057_s20, %s2438_s1 }
  0x4a   : > { %p1633_p5 = scmp.ne.s32.totalorder %s2057_s20, %s1632_s23  ;;  %p1639_p4 = scmp.lt.u32.totalorder %s1637_s29, %s1632_s23 }
  0x4b   : > { %p1641_p8 = scmp.lt.u32.totalorder %s1632_s23, %s2057_s20 }
  0x4c   : > { %p1635_p9 = pnand %p2070_p7, %p1633_p5  ;;  %p1640_p6 = por %p1639_p4, %p1638_p2 }
  0x4e   : > { %p1636_p1 = pneg %p1635_p9  ;;  %p1642_p12 = por %p1641_p8, %p1640_p6 }
  0x50   : > { %p1643_p0 = pnand %p1642_p12, %p1636_p1 }
  0x52   : > { %1646 = shalt.err (!%p1643_p0)
}
  0x53   : > { %s1647_s17 = scalar_lea.vmem %s2060_s3, 64  ;;  %s1878_s12 = smov [#allocation7]  }
  0x54   : > { %p1648_p5 = scmp.ne.s32.totalorder %s2060_s3, %s1647_s17  ;;  %s1652_s21 = sshll.u32 %s1878_s12, 4  ;;  %s1653_s21 = int_to_ptr.vmem [resolvable:$false] %s1652_s21 }
  0x55   : > { %s1654_s10 = scalar_lea.vmem %s1653_s21, 128  ;;  %p1655_p10 = scmp.lt.s32.totalorder %s2060_s3, %s1653_s21 }
  0x56   : > { %p1650_p9 = pnand %p1648_p5, %p2070_p7  ;;  %p1656_p11 = scmp.lt.s32.totalorder %s1654_s10, %s1647_s17 }
  0x58   : > { %p1651_p13 = pneg %p1650_p9  ;;  %p1657_p2 = por %p1656_p11, %p1655_p10 }
  0x5a   : > { %p1658_p4 = pnand %p1657_p2, %p1651_p13 }
  0x5c   : > { %1661 = shalt.err (!%p1658_p4)
}
  0x5d   : > { %1497 = dma.hbm_to_vmem [thread:$0]  (!%p2048_p3), %s2057_s20, 64, %s2060_s3, %s2064_s28  }
  0x5e   : > { %s2440_s4 = sld [smem:[#allocation28_spill]]  ;;  %p2441_p11 = scmp.ne.s32.totalorder %s2431_s14, 0 }
  0x60   : > { %p2442_p13 = pneg %p2441_p11 }
  0x64   : > { %s1662_s18 = scalar_lea.hbm %s2440_s4, 256 }
  0x65   : > { %p1663_p1 = scmp.ne.s32.totalorder %s2440_s4, %s1662_s18  ;;  %p1669_p8 = scmp.lt.u32.totalorder %s1662_s18, %s2440_s4 }
  0x67   : > { %p1665_p10 = pnand %p1663_p1, %p2442_p13 }
  0x69   : > { %p1666_p6 = pneg %p1665_p10 }
  0x6b   : > { %p1671_p12 = pnand %p1669_p8, %p1666_p6 }
  0x6d   : > { %1674 = shalt.err (!%p1671_p12)
}
  0x6e   : > { %s1675_s3 = scalar_lea.vmem %s273_s15, 256  ;;  %p2443_p5 = pmov %p2442_p13 }
  0x6f   : > { %p1676_p0 = scmp.ne.s32.totalorder %s273_s15, %s1675_s3  ;;  %p1683_p4 = scmp.lt.s32.totalorder %s273_s15, %s273_s15 }
  0x70   : > { %p1684_p3 = scmp.lt.s32.totalorder %s1675_s3, %s1675_s3 }
  0x71   : > { %p1678_p9 = pnand %p1676_p0, %p2443_p5 }
  0x72   : > { %p1685_p7 = por %p1684_p3, %p1683_p4 }
  0x73   : > { %p1679_p2 = pneg %p1678_p9 }
  0x75   : > { %p1686_p1 = pnand %p1685_p7, %p1679_p2 }
  0x77   : > { %1689 = shalt.err (!%p1686_p1)
}
  0x78   : > { %s2444_s1 = smov 4   ;;  %s2445_s20 = smov 64  }
  0x79   : > { %1490 = dma.hbm_to_vmem [thread:$0]  (!%p2441_p11), %s2440_s4, 256, %s273_s15, [#allocation11], %s2445_s20, %s2445_s20, %s2444_s1  }
  0x7a   : > { %s2122_s12 = scalar_lea.hbm %s2395_s0, %s2043_s22  ;;  %s293_s14 = scalar_lea.vmem [#allocation4], %s2040_s13 }
  0x7b   : > { %s301_s17 = sshll.u32 %s293_s14, 4  ;;  %s2131_s10 = scalar_lea.hbm %s2397_s2, %s2043_s22  ;;  %s2125_s17 = int_to_ptr.vmem [resolvable:$true] %s301_s17 }
  0x7c   : > { %s2446_s29 = sand.u32 1, %s1860_s26   ;;  %s1690_s1 = scalar_lea.hbm %s2122_s12, 64 }
  0x7d   : > { %s290_s15 = scalar_lea.sflag [#allocation5], %s2446_s29  ;;  %p1691_p3 = scmp.ne.s32.totalorder %s2122_s12, %s1690_s1 }
  0x7e   : > { %p2447_p7 = scmp.ne.s32.totalorder %s2439_s8, 0  ;;  %s1695_s18 = scalar_lea.hbm %s2395_s0, 128 }
  0x7f   : > { %p1696_p10 = scmp.lt.u32.totalorder %s2122_s12, %s2395_s0  ;;  %p1697_p6 = scmp.lt.u32.totalorder %s1695_s18, %s1690_s1 }
  0x80   : > { %p1693_p11 = pnand %p1691_p3, %p2447_p7  ;;  %p1699_p12 = scmp.lt.u32.totalorder %s1690_s1, %s2122_s12 }
  0x81   : > { %p1698_p8 = por %p1697_p6, %p1696_p10 }
  0x82   : > { %p1694_p13 = pneg %p1693_p11 }
  0x83   : > { %p1700_p0 = por %p1699_p12, %p1698_p8 }
  0x85   : > { %p1701_p5 = pnand %p1700_p0, %p1694_p13 }
  0x87   : > { %1704 = shalt.err (!%p1701_p5)
}
  0x88   : > { %s1705_s22 = scalar_lea.vmem %s2125_s17, 64  ;;  %s1879_s21 = smov [#allocation4]  }
  0x89   : > { %p1706_p9 = scmp.ne.s32.totalorder %s2125_s17, %s1705_s22  ;;  %s1710_s3 = sshll.u32 %s1879_s21, 4  ;;  %s1711_s3 = int_to_ptr.vmem [resolvable:$false] %s1710_s3 }
  0x8a   : > { %s1712_s4 = scalar_lea.vmem %s1711_s3, 128  ;;  %p1713_p1 = scmp.lt.s32.totalorder %s2125_s17, %s1711_s3 }
  0x8b   : > { %p1708_p2 = pnand %p1706_p9, %p2447_p7  ;;  %p1714_p3 = scmp.lt.s32.totalorder %s1712_s4, %s1705_s22 }
  0x8d   : > { %p1709_p4 = pneg %p1708_p2  ;;  %p1715_p11 = por %p1714_p3, %p1713_p1 }
  0x8f   : > { %p1716_p10 = pnand %p1715_p11, %p1709_p4 }
  0x91   : > { %1719 = shalt.err (!%p1716_p10)
}
  0x92   : > { %p2448_p13 = scmp.ne.s32.totalorder %s2437_s16, 0  ;;  %s330_s29 = scalar_lea.vmem [#allocation9], %s2040_s13 }
  0x93   : > { %s337_s1 = sshll.u32 %s330_s29, 4  ;;  %s1720_s20 = scalar_lea.hbm %s2131_s10, 64  ;;  %s338_s1 = int_to_ptr.vmem [resolvable:$true] %s337_s1 }
  0x94   : > { %1494 = dma.hbm_to_vmem [thread:$0]  (!%p2448_p13), %s2122_s12, 64, %s2125_s17, %s290_s15  }
  0x95   : > { %p1721_p6 = scmp.ne.s32.totalorder %s2131_s10, %s1720_s20  ;;  %s1725_s14 = scalar_lea.hbm %s2397_s2, 128 }
  0x96   : > { %p1726_p0 = scmp.lt.u32.totalorder %s2131_s10, %s2397_s2  ;;  %p1727_p5 = scmp.lt.u32.totalorder %s1725_s14, %s1720_s20 }
  0x97   : > { %p1723_p8 = pnand %p1721_p6, %p2447_p7  ;;  %p1729_p2 = scmp.lt.u32.totalorder %s1720_s20, %s2131_s10 }
  0x98   : > { %p1728_p9 = por %p1727_p5, %p1726_p0 }
  0x99   : > { %p1724_p12 = pneg %p1723_p8 }
  0x9a   : > { %p1730_p4 = por %p1729_p2, %p1728_p9 }
  0x9c   : > { %p1731_p1 = pnand %p1730_p4, %p1724_p12 }
  0x9e   : > { %1734 = shalt.err (!%p1731_p1)
}
  0x9f   : > { %s1735_s13 = scalar_lea.vmem %s338_s1, 64  ;;  %s1880_s12 = smov [#allocation9]  }
  0xa0   : > { %p1736_p3 = scmp.ne.s32.totalorder %s338_s1, %s1735_s13  ;;  %s1740_s17 = sshll.u32 %s1880_s12, 4  ;;  %s1741_s17 = int_to_ptr.vmem [resolvable:$false] %s1740_s17 }
  0xa1   : > { %s1742_s15 = scalar_lea.vmem %s1741_s17, 128  ;;  %p1743_p6 = scmp.lt.s32.totalorder %s338_s1, %s1741_s17 }
  0xa2   : > { %p1738_p11 = pnand %p1736_p3, %p2447_p7  ;;  %p1744_p8 = scmp.lt.s32.totalorder %s1742_s15, %s1735_s13 }
  0xa4   : > { %p1739_p10 = pneg %p1738_p11  ;;  %p1745_p13 = por %p1744_p8, %p1743_p6 }
  0xa6   : > { %p1746_p0 = pnand %p1745_p13, %p1739_p10 }
  0xa8   : > { %1749 = shalt.err (!%p1746_p0)
}
  0xa9   : > { %p2449_p5 = scmp.ne.s32.totalorder %s2437_s16, 0  ;;  %p2450_p12 = scmp.ne.s32.totalorder %s2430_s11, 0 }
  0xaa   : > { %s2178_s8 = sand.u32 (!%p2450_p12), 1, %s1856_s25   ;;  %p2451_p7 = scmp.ne.s32.totalorder (!%p2450_p12), %s2427_s9, 0 }
  0xab   : > { %1500 = dma.hbm_to_vmem [thread:$0]  (!%p2449_p5), %s2131_s10, 64, %s338_s1, %s2064_s28  }
  0xac   : > { %346 = sbr.rel (%p2450_p12) target bundleno = 1438 (0x59e), region = 44  ;;  %s2181_s3 = sshll.u32 (!%p2450_p12), %s2178_s8, 2 }
  0xad   : > { %s349_s4 = scalar_lea.sflag (!%p2450_p12), [#allocation5], %s2178_s8  ;;  %s352_s29 = scalar_lea.vmem (!%p2450_p12), [#allocation4], %s2181_s3 }
  0xb3   : > { %1831 = dma.done.wait (%p2451_p7), %s349_s4, 64  }
  0xb4   : > { %1833 = vsyncadd (%p2451_p7), %s349_s4, 4294967232  ;;  %s357_s28 = sand.u32 1, %s1964_s30   ;;  %s361_s16 = scalar_lea.vmem [#allocation7], %s2181_s3 }
  0xb5   : > { %s358_s11 = scalar_lea.sflag [#allocation8], %s357_s28 }
  0xb6   : > { %1835 = dma.done.wait (%p2451_p7), %s358_s11, 128  }
  0xb7   : > { %1837 = vsyncadd (%p2451_p7), %s358_s11, 4294967168  ;;  %s370_s10 = scalar_lea.vmem [#allocation9], %s2181_s3  ;;  %p2452_p13 = scmp.eq.s32.totalorder %s1964_s30, 0 }
  0xb9   : > { %1839 = dma.done.wait (%p2452_p13), [#allocation11], 512   ;;  %p2453_p9 = pmov %p2452_p13 }
  0xba   : > { %v1881_v0 = vmov 0.0   ;;  %vm1882_vm0 = vmmov 0   ;;  %v1576_v1 = vld [vmem:[#allocation12] sm:$0xff]   ;;  %v1577_v2 = vld [vmem:[#allocation12 + $0x8] sm:$0xff]   ;;  %vm447_vm1 = vcmask 261120   ;;  %v1578_v5 = vld [vmem:[#allocation10] sm:$0xff]  }
  0xbb   : > { %1841 = vsyncadd (%p2453_p9), [#allocation11], 4294966784  ;;  %1394 = vmatprep.subr.bf16.mxu0 %v1881_v0  ;;  %1398 = vmatprep.mubr.msk.bf16.mxu0 %vm1882_vm0, %v1881_v0  ;;  %v1580_v3 = vld [vmem:[%s2400_s5] sm:$0xff]   ;;  %v1579_v6 = vld [vmem:[#allocation10 + $0x8] sm:$0xff]   ;;  %vm492_vm2 = vcmask 257024   ;;  %vm619_vm3 = vcmask 64512  }
  0xbc   : > { %1402 = vmatprep.subr.bf16.mxu1 %v1881_v0  ;;  %1406 = vmatprep.mubr.msk.bf16.mxu1 %vm1882_vm0, %v1881_v0  ;;  %v429_v4 = vld [vmem:[%s361_s16] sm:$0xf]  ;;  %v555_v7 = vld [vmem:[%s352_s29] sm:$0xf]  ;;  %v1581_v8 = vld [vmem:[%s2400_s5 + $0x8] sm:$0xff]   ;;  %s1883_s23 = smov 112  }
  0xbd   : > { %1395 = vmatpush3.bf16.msra.mxu0 %v1576_v1  ;;  %1403 = vmatpush3.bf16.msra.mxu1 %v1580_v3  ;;  %v430_v9 = vld [vmem:[%s370_s10] sm:$0xf]  ;;  %s1884_s18 = smov 120   ;;  %s1885_s14 = smov 104   ;;  %vm682_vm4 = vcmask 1043456  }
  0xbe   : > { %1396 = vmatprep.subr.bf16.mxu0 %v1881_v0  ;;  %1404 = vmatprep.subr.bf16.mxu1 %v1881_v0  ;;  %s1336_s22 = sshll.u32 %s2178_s8, 5  ;;  %s1335_s13 = sshll.u32 %s2178_s8, 3 }
  0xbf   : > { %s2269_s21 = scalar_lea.vmem [#allocation14], %s1336_s22  ;;  %s2296_s12 = scalar_lea.vmem [#allocation13], %s1335_s13 }
  0xc0   : > { %s1886_s17 = smov 8   ;;  %s1365_s15 = sshll.u32 %s1864_s27, 7 }
  0xc1   : > { %1397 = vmatpush3.bf16.msra.mxu0 %v1577_v2  ;;  %1405 = vmatpush3.bf16.msra.mxu1 %v1581_v8  ;;  %s2307_s29 = scalar_lea.hbm %s2402_s7, %s1365_s15  ;;  %s1139_s28 = sshll.u32 %s2269_s21, 4  ;;  %s2310_s28 = int_to_ptr.vmem [resolvable:$true] %s1139_s28 }
  0xc2   : > { %1410 = vmatprep.subr.bf16.mxu0 %v1881_v0  ;;  %1418 = vmatprep.subr.bf16.mxu1 %v1881_v0  ;;  %s1887_s11 = smov 16   ;;  %s1112_s16 = scalar_lea.sflag [#allocation15], %s2178_s8 }
  0xc3   : > { %s1750_s10 = scalar_lea.vmem %s2310_s28, 512  ;;  %p2454_p4 = scmp.ne.s32.totalorder %s2435_s19, 0 }
  0xc4   : > { %1399 = vmatmul.mubr.msk.bf16.vlgmr.msra.gmra.mrb[0].mxu0 %vm447_vm1, %v429_v4  ;;  %1407 = vmatmul.mubr.msk.bf16.vlgmr.msra.gmra.mrb[0].mxu1 %vm447_vm1, %v430_v9  ;;  %p1751_p2 = scmp.ne.s32.totalorder %s2310_s28, %s1750_s10  ;;  %s1888_s30 = smov [#allocation14]  }
  0xc5   : > { %1411 = vmatpush3.bf16.msra.mxu0 %v1578_v5  ;;  %1414 = vmatprep.mubr.msk.bf16.mxu0 %vm1882_vm0, %v1881_v0  ;;  %s1754_s9 = sshll.u32 %s1888_s30, 4  ;;  %s1755_s9 = int_to_ptr.vmem [resolvable:$false] %s1754_s9 }
  0xc6   : > { %1412 = vmatprep.subr.bf16.mxu0 %v1881_v0  ;;  %1420 = vmatprep.mubr.msk.bf16.mxu1 %vm1882_vm0, %v1881_v0  ;;  %p1752_p1 = pnand %p1751_p2, %p2454_p4  ;;  %s1756_s1 = scalar_lea.vmem %s1755_s9, 1024 }
  0xc7   : > { %p1757_p11 = scmp.lt.s32.totalorder %s2310_s28, %s1755_s9  ;;  %p1758_p10 = scmp.lt.s32.totalorder %s1756_s1, %s1750_s10 }
  0xc8   : > { %p1753_p3 = pneg %p1752_p1 }
  0xc9   : > { %1413 = vmatpush3.bf16.msra.mxu0 %v1579_v6  ;;  %p1759_p6 = por %p1758_p10, %p1757_p11 }
  0xca   : > { %1424 = vmatprep.subr.bf16.mxu0 %v1881_v0 }
  0xcb   : > { %p1760_p8 = pnand %p1759_p6, %p1753_p3 }
  0xcc   : > { %1415 = vmatmul.mubr.msk.bf16.vlgmr.msra.gmra.mrb[4].mxu0 %vm447_vm1, %v555_v7 }
  0xcd   : > { %1426 = vmatprep.mubr.msk.bf16.mxu0 %vm1882_vm0, %v1881_v0 }
 0x197   : > { %v485_v10 = vpop.f32.mrb[0].mxu0  ;;  %v547_v25 = vpop.f32.mrb[0].mxu1 }
 0x198   : > { %v491_v11 = vpack.c.bf16 %v485_v10, %v485_v10  ;;  %v1400_v12 = vpop.f32.mrb[1].mxu0  ;;  %v553_v26 = vpack.c.bf16 %v547_v25, %v547_v25  ;;  %v1408_v27 = vpop.f32.mrb[1].mxu1 }
 0x199   : > { %v488_v13 = vpop.f32.mrb[2].mxu0  ;;  %v550_v28 = vpop.f32.mrb[2].mxu1 }
 0x19a   : > { %493 = vst.msk [vmem:[#allocation2] sm:$0xf] %vm492_vm2, %v491_v11  ;;  %v1401_v14 = vpop.f32.mrb[3].mxu0  ;;  %554 = vst.msk [vmem:[#allocation3] sm:$0xf] %vm492_vm2, %v553_v26  ;;  %v1409_v29 = vpop.f32.mrb[3].mxu1 }
 0x19f   : > { %v610_v15 = vpop.f32.mrb[4].mxu0 }
 0x1a0   : > { %v1416_v16 = vpop.f32.mrb[5].mxu0  ;;  %v616_v22 = vpack.c.bf16 %v610_v15, %v610_v15 }
 0x1a1   : > { %v617_v17 = vld [vmem:[#allocation2] sm:$0xf]  ;;  %v613_v21 = vpop.f32.mrb[6].mxu0  ;;  %v618_v30 = vld [vmem:[#allocation3] sm:$0xf] }
 0x1a2   : > { %v1582_v18 = vld [vmem:[#allocation2] ss:$0 sps:$4 sm:$0xff]   ;;  %v624_v19 = vsel %vm619_vm3, %v617_v17, 0  ;;  %v1417_v23 = vpop.f32.mrb[7].mxu0  ;;  %v684_v31 = vsel %vm682_vm4, %v618_v30, 0 }
 0x1a3   : > { %v1583_v20 = vld [vmem:[#allocation2] ss:$0 sps:$4 sm:$0xff]   ;;  %1419 = vmatpush3.bf16.xpose.msra.mxu1 %v624_v19  ;;  %861 = vrot.lane.b32.xlu1 %v1582_v18, %s1883_s23  ;;  %v1585_v3 = vld [vmem:[#allocation3] ss:$0 sps:$4 sm:$0xff]  }
 0x1a4   : > { %735 = vrot.lane.b32.xlu0 %v1583_v20, %s1884_s18  ;;  %1430 = vmatprep.subr.bf16.mxu1 %v1881_v0  ;;  %v1584_v24 = vld [vmem:[#allocation2] ss:$0 sps:$4 sm:$0xff]   ;;  %v1586_v19 = vld [vmem:[#allocation3] ss:$0 sps:$4 sm:$0xff]  }
 0x1a5   : > { %1425 = vmatpush3.bf16.msra.mxu0 %v684_v31  ;;  %v1587_v23 = vld [vmem:[#allocation3] ss:$0 sps:$4 sm:$0xff]  }
 0x1a6   : > { %1436 = vmatprep.subr.bf16.mxu0 %v1881_v0 }
 0x1a7   : > { %856 = vrot.lane.b32.xlu1 %v616_v22, %s1883_s23 }
 0x1a8   : > { %730 = vrot.lane.b32.xlu0 %v616_v22, %s1884_s18 }
 0x1aa   : > { %1421 = vmatmul.mubr.msk.bf16.vlgmr.msra.gmra.mrb[4].mxu1 %vm619_vm3, %v616_v22 }
 0x1ab   : > { %982 = vrot.lane.b32.xlu1 %v616_v22, %s1885_s14  ;;  %1432 = vmatprep.mubr.msk.bf16.mxu1 %vm1882_vm0, %v1881_v0 }
 0x1ac   : > { %987 = vrot.lane.b32.xlu0 %v1584_v24, %s1885_s14 }
 0x215   : > { %v862_v34 = vpop.permute.xlu1 %861 }
 0x216   : > { %v736_v32 = vpop.permute.xlu0 %735  ;;  %v867_v36 = vsel %vm619_vm3, %v862_v34, 0 }
 0x217   : > { %v741_v33 = vsel %vm619_vm3, %v736_v32, 0 }
 0x218   : > { %1431 = vmatpush3.bf16.xpose.msra.mxu1 %v741_v33 }
 0x219   : > { %1442 = vmatprep.subr.bf16.mxu1 %v1881_v0  ;;  %v857_v38 = vpop.permute.xlu1 %856 }
 0x21a   : > { %v731_v35 = vpop.permute.xlu0 %730 }
 0x21d   : > { %v983_v40 = vpop.permute.xlu1 %982 }
 0x21e   : > { %v988_v37 = vpop.permute.xlu0 %987 }
 0x21f   : > { %1433 = vmatmul.mubr.msk.bf16.vlgmr.msra.gmra.mrb[8].mxu1 %vm619_vm3, %v731_v35  ;;  %v993_v39 = vsel %vm619_vm3, %v988_v37, 0 }
 0x220   : > { %1443 = vmatpush3.bf16.xpose.msra.mxu1 %v867_v36  ;;  %1444 = vmatprep.mubr.msk.bf16.mxu1 %vm1882_vm0, %v1881_v0 }
 0x221   : > { %1454 = vmatprep.subr.bf16.mxu1 %v1881_v0 }
 0x227   : > { %1445 = vmatmul.mubr.msk.bf16.vlgmr.msra.gmra.mrb[12].mxu1 %vm619_vm3, %v857_v38 }
 0x228   : > { %1455 = vmatpush3.bf16.xpose.msra.mxu1 %v993_v39  ;;  %1456 = vmatprep.mubr.msk.bf16.mxu1 %vm1882_vm0, %v1881_v0 }
 0x22f   : > { %1457 = vmatmul.mubr.msk.bf16.vlgmr.msra.gmra.mrb[16].mxu1 %vm619_vm3, %v983_v40 }
 0x27d   : > { %v660_v41 = vpop.f32.mrb[4].mxu1 }
 0x27e   : > { %v1422_v42 = vpop.f32.mrb[5].mxu1  ;;  %v666_v43 = vsel %vm619_vm3, %v660_v41, -inf }
 0x27f   : > { %667 = vmax.xlane.f32.xlu0 %v666_v43  ;;  %v663_v44 = vpop.f32.mrb[6].mxu1 }
 0x280   : > { %v1423_v45 = vpop.f32.mrb[7].mxu1 }
 0x2f2   : > { %v777_v46 = vpop.f32.mrb[8].mxu1 }
 0x2f3   : > { %v1434_v47 = vpop.f32.mrb[9].mxu1  ;;  %v783_v48 = vsel %vm619_vm3, %v777_v46, -inf }
 0x2f4   : > { %784 = vmax.xlane.f32.xlu1 %v783_v48  ;;  %v780_v49 = vpop.f32.mrb[10].mxu1 }
 0x2f5   : > { %v1435_v50 = vpop.f32.mrb[11].mxu1 }
 0x2fa   : > { %v903_v51 = vpop.f32.mrb[12].mxu1 }
 0x2fb   : > { %v1446_v52 = vpop.f32.mrb[13].mxu1  ;;  %v909_v53 = vsel %vm619_vm3, %v903_v51, -inf }
 0x2fc   : > { %910 = vmax.xlane.f32.xlu0 %v909_v53  ;;  %v906_v54 = vpop.f32.mrb[14].mxu1 }
 0x2fd   : > { %v1447_v55 = vpop.f32.mrb[15].mxu1 }
 0x302   : > { %v1029_v56 = vpop.f32.mrb[16].mxu1 }
 0x303   : > { %v1458_v57 = vpop.f32.mrb[17].mxu1  ;;  %v1035_v58 = vsel %vm619_vm3, %v1029_v56, -inf }
 0x304   : > { %1036 = vmax.xlane.f32.xlu0 %v1035_v58  ;;  %v1032_v59 = vpop.f32.mrb[18].mxu1 }
 0x305   : > { %v1459_v60 = vpop.f32.mrb[19].mxu1 }
 0x30c   : > { %v668_v61 = vpop.xlane.xlu0 %667 }
 0x30d   : > { %v669_v62 = vsub.f32 %v660_v41, %v668_v61 }
 0x30f   : > { %v670_v63 = vmul.f32 1.442695, %v669_v62 }
 0x311   : > { %1588 = vpow2.f32 %v670_v63 }
 0x31b   : > { %v1589_v1 = vpop.eup %1588 }
 0x31c   : > { %v672_v2 = vsel %vm619_vm3, %v1589_v1, 0.0 }
 0x31d   : > { %673 = vadd.xlane.f32.xlu1 %v672_v2 }
 0x32e   : > { %800 = vrot.lane.b32.xlu1 %v1585_v3, %s1884_s18 }
 0x381   : > { %v785_v4 = vpop.xlane.xlu1 %784 }
 0x382   : > { %v786_v5 = vsub.f32 %v777_v46, %v785_v4 }
 0x384   : > { %v787_v6 = vmul.f32 1.442695, %v786_v5 }
 0x386   : > { %1590 = vpow2.f32 %v787_v6 }
 0x389   : > { %v911_v7 = vpop.xlane.xlu0 %910 }
 0x38a   : > { %v912_v8 = vsub.f32 %v903_v51, %v911_v7 }
 0x38c   : > { %v913_v9 = vmul.f32 1.442695, %v912_v8 }
 0x38e   : > { %1592 = vpow2.f32 %v913_v9 }
 0x390   : > { %v1591_v10 = vpop.eup %1590 }
 0x391   : > { %v1037_v11 = vpop.xlane.xlu0 %1036  ;;  %v789_v12 = vsel %vm619_vm3, %v1591_v10, 0.0 }
 0x392   : > { %v1038_v13 = vsub.f32 %v1029_v56, %v1037_v11  ;;  %790 = vadd.xlane.f32.xlu0 %v789_v12 }
 0x394   : > { %v1039_v14 = vmul.f32 1.442695, %v1038_v13 }
 0x396   : > { %1594 = vpow2.f32 %v1039_v14 }
 0x398   : > { %v1593_v15 = vpop.eup %1592 }
 0x399   : > { %v915_v16 = vsel %vm619_vm3, %v1593_v15, 0.0 }
 0x39a   : > { %916 = vadd.xlane.f32.xlu1 %v915_v16 }
 0x3a0   : > { %v1595_v17 = vpop.eup %1594 }
 0x3a1   : > { %v1041_v18 = vsel %vm619_vm3, %v1595_v17, 0.0 }
 0x3a2   : > { %1042 = vadd.xlane.f32.xlu0 %v1041_v18 }
 0x3aa   : > { %v674_v20 = vpop.xlane.xlu1 %673 }
 0x3ab   : > { %1596 = vrcp.f32 %v674_v20  ;;  %1052 = vrot.lane.b32.xlu1 %v1586_v19, %s1885_s14 }
 0x3ae   : > { %v801_v24 = vpop.permute.xlu1 %800 }
 0x3af   : > { %v806_v26 = vsel %vm682_vm4, %v801_v24, 0 }
 0x3b5   : > { %v1597_v21 = vpop.eup %1596 }
 0x3b6   : > { %v676_v22 = vmul.f32 %v1597_v21, %v1589_v1 }
 0x3b8   : > { %677 = vst.msk [vmem:[%s2269_s21] sm:$0xff] %vm619_vm3, %v676_v22  ;;  %926 = vrot.lane.b32.xlu0 %v1587_v23, %s1883_s23  ;;  %v678_v25 = vpack.c.bf16 %v676_v22, %v676_v22 }
 0x3ba   : > { %1427 = vmatmul.mubr.msk.bf16.vlgmr.msra.gmra.mrb[8].mxu0 %vm619_vm3, %v678_v25 }
 0x3bb   : > { %1437 = vmatpush3.bf16.msra.mxu0 %v806_v26  ;;  %1438 = vmatprep.mubr.msk.bf16.mxu0 %vm1882_vm0, %v1881_v0 }
 0x3bc   : > { %1448 = vmatprep.subr.bf16.mxu0 %v1881_v0 }
 0x41f   : > { %v791_v27 = vpop.xlane.xlu0 %790 }
 0x420   : > { %1598 = vrcp.f32 %v791_v27 }
 0x427   : > { %v917_v28 = vpop.xlane.xlu1 %916 }
 0x428   : > { %1600 = vrcp.f32 %v917_v28 }
 0x42a   : > { %v1599_v29 = vpop.eup %1598 }
 0x42b   : > { %v793_v30 = vmul.f32 %v1599_v29, %v1591_v10  ;;  %v1053_v37 = vpop.permute.xlu1 %1052 }
 0x42c   : > { %v1058_v39 = vsel %vm682_vm4, %v1053_v37, 0 }
 0x42d   : > { %1350 = vst.msk [vmem:[%s2269_s21 + $0x8] sm:$0xff] %vm619_vm3, %v793_v30  ;;  %v796_v31 = vpack.c.bf16 %v793_v30, %v793_v30 }
 0x42f   : > { %1439 = vmatmul.mubr.msk.bf16.vlgmr.msra.gmra.mrb[12].mxu0 %vm619_vm3, %v796_v31  ;;  %v1043_v32 = vpop.xlane.xlu0 %1042 }
 0x430   : > { %1602 = vrcp.f32 %v1043_v32  ;;  %1450 = vmatprep.mubr.msk.bf16.mxu0 %vm1882_vm0, %v1881_v0 }
 0x432   : > { %v1601_v33 = vpop.eup %1600 }
 0x433   : > { %v919_v34 = vmul.f32 %v1601_v33, %v1593_v15  ;;  %v927_v35 = vpop.permute.xlu0 %926 }
 0x434   : > { %v932_v36 = vsel %vm682_vm4, %v927_v35, 0 }
 0x435   : > { %1355 = vst.msk [vmem:[%s2269_s21 + $0x10] sm:$0xff] %vm619_vm3, %v919_v34  ;;  %1449 = vmatpush3.bf16.msra.mxu0 %v932_v36  ;;  %v922_v38 = vpack.c.bf16 %v919_v34, %v919_v34 }
 0x436   : > { %1460 = vmatprep.subr.bf16.mxu0 %v1881_v0 }
 0x438   : > { %1451 = vmatmul.mubr.msk.bf16.vlgmr.msra.gmra.mrb[16].mxu0 %vm619_vm3, %v922_v38 }
 0x439   : > { %1461 = vmatpush3.bf16.msra.mxu0 %v1058_v39  ;;  %1462 = vmatprep.mubr.msk.bf16.mxu0 %vm1882_vm0, %v1881_v0 }
 0x43a   : > { %v1603_v40 = vpop.eup %1602 }
 0x43b   : > { %v1045_v41 = vmul.f32 %v1603_v40, %v1595_v17 }
 0x43d   : > { %1360 = vst.msk [vmem:[%s2269_s21 + $0x18] sm:$0xff] %vm619_vm3, %v1045_v41  ;;  %v1048_v42 = vpack.c.bf16 %v1045_v41, %v1045_v41 }
 0x440   : > { %1463 = vmatmul.mubr.msk.bf16.vlgmr.msra.gmra.mrb[20].mxu0 %vm619_vm3, %v1048_v42 }
 0x48d   : > { %v720_v43 = vpop.f32.mrb[8].mxu0 }
 0x48e   : > { %726 = vst.msk [vmem:[%s2296_s12] sm:$0xff] %vm619_vm3, %v720_v43  ;;  %v1428_v44 = vpop.f32.mrb[9].mxu0 }
 0x48f   : > { %v723_v45 = vpop.f32.mrb[10].mxu0 }
 0x490   : > { %v1429_v0 = vpop.f32.mrb[11].mxu0 }
 0x502   : > { %v842_v46 = vpop.f32.mrb[12].mxu0 }
 0x503   : > { %849 = vrot.lane.b32.xlu1 %v842_v46, %s1886_s17  ;;  %v1440_v47 = vpop.f32.mrb[13].mxu0 }
 0x504   : > { %v845_v48 = vpop.f32.mrb[14].mxu0 }
 0x505   : > { %v1441_v49 = vpop.f32.mrb[15].mxu0 }
 0x50b   : > { %v968_v50 = vpop.f32.mrb[16].mxu0 }
 0x50c   : > { %975 = vrot.lane.b32.xlu0 %v968_v50, %s1887_s11  ;;  %v1452_v51 = vpop.f32.mrb[17].mxu0 }
 0x50d   : > { %v971_v52 = vpop.f32.mrb[18].mxu0 }
 0x50e   : > { %1763 = shalt.err (!%p1760_p8)
}
 0x50f   : > { %s1764_s20 = scalar_lea.hbm %s2307_s29, 512  ;;  %s1768_s14 = scalar_lea.hbm %s2402_s7, 1024 }
 0x510   : > { %p1765_p0 = scmp.ne.s32.totalorder %s2307_s29, %s1764_s20  ;;  %p1769_p7 = scmp.lt.u32.totalorder %s2307_s29, %s2402_s7 }
 0x511   : > { %p1770_p13 = scmp.lt.u32.totalorder %s1768_s14, %s1764_s20  ;;  %p1772_p2 = scmp.lt.u32.totalorder %s1764_s20, %s2307_s29 }
 0x512   : > { %p1766_p5 = pnand %p1765_p0, %p2454_p4 }
 0x513   : > { %p1771_p9 = por %p1770_p13, %p1769_p7 }
 0x514   : > { %p1767_p12 = pneg %p1766_p5 }
 0x515   : > { %p1773_p1 = por %p1772_p2, %p1771_p9 }
 0x517   : > { %p1774_p3 = pnand %p1773_p1, %p1767_p12 }
 0x519   : > { %1777 = shalt.err (!%p1774_p3)
}
 0x51a   : > { %s1889_s13 = smov 128   ;;  %s1890_s3 = smov 256   ;;  %v1453_v53 = vpop.f32.mrb[19].mxu0  ;;  %vm852_vm5 = vcmask 130112   ;;  %vm978_vm6 = vcmask 195712   ;;  %vm1104_vm7 = vcmask 261312  }
 0x51b   : > { %1481 = dma.vmem_to_hbm [thread:$0]  (%p2454_p4), %s2310_s28, 512, %s2307_s29, %s1112_s16, %s1889_s13, %s1890_s3, %s1886_s17   ;;  %v1094_v54 = vpop.f32.mrb[20].mxu0 }
 0x51c   : > { %s1891_s4 = smov 24   ;;  %v1464_v55 = vpop.f32.mrb[21].mxu0  ;;  %s1126_s11 = sshll.u32 %s2296_s12, 4  ;;  %s2347_s11 = int_to_ptr.vmem [resolvable:$true] %s1126_s11 }
 0x51d   : > { %1101 = vrot.lane.b32.xlu1 %v1094_v54, %s1891_s4  ;;  %v1097_v56 = vpop.f32.mrb[22].mxu0  ;;  %s2345_s28 = scalar_lea.hbm %s2401_s6, %s1365_s15  ;;  %s1107_s16 = scalar_lea.sflag [#allocation6], %s2178_s8 }
 0x51e   : > { %v1465_v57 = vpop.f32.mrb[23].mxu0  ;;  %s1778_s10 = scalar_lea.vmem %s2347_s11, 128  ;;  %s1892_s30 = smov [#allocation13]  }
 0x51f   : > { %p1779_p11 = scmp.ne.s32.totalorder %s2347_s11, %s1778_s10  ;;  %s1782_s27 = sshll.u32 %s1892_s30, 4  ;;  %s1783_s27 = int_to_ptr.vmem [resolvable:$false] %s1782_s27 }
 0x520   : > { %s1784_s9 = scalar_lea.vmem %s1783_s27, 256  ;;  %p1785_p8 = scmp.lt.s32.totalorder %s2347_s11, %s1783_s27 }
 0x521   : > { %p1780_p10 = pnand %p1779_p11, %p2454_p4  ;;  %p1786_p0 = scmp.lt.s32.totalorder %s1784_s9, %s1778_s10 }
 0x523   : > { %p1781_p6 = pneg %p1780_p10  ;;  %p1787_p5 = por %p1786_p0, %p1785_p8 }
 0x525   : > { %p1788_p12 = pnand %p1787_p5, %p1781_p6 }
 0x575   : > { %v850_v58 = vpop.permute.xlu1 %849 }
 0x576   : > { %853 = vst.msk [vmem:[%s2296_s12] sm:$0xff] %vm852_vm5, %v850_v58 }
 0x57e   : > { %v976_v59 = vpop.permute.xlu0 %975 }
 0x57f   : > { %979 = vst.msk [vmem:[%s2296_s12] sm:$0xff] %vm978_vm6, %v976_v59 }
 0x58f   : > { %v1102_v60 = vpop.permute.xlu1 %1101 }
 0x590   : > { %1105 = vst.msk [vmem:[%s2296_s12] sm:$0xff] %vm1104_vm7, %v1102_v60 }
 0x591   : > { %1791 = shalt.err (!%p1788_p12)
}
 0x592   : > { %s1792_s8 = scalar_lea.hbm %s2345_s28, 128  ;;  %s1796_s1 = scalar_lea.hbm %s2401_s6, 256 }
 0x593   : > { %p1793_p7 = scmp.ne.s32.totalorder %s2345_s28, %s1792_s8  ;;  %p1797_p2 = scmp.lt.u32.totalorder %s2345_s28, %s2401_s6 }
 0x594   : > { %p1798_p1 = scmp.lt.u32.totalorder %s1796_s1, %s1792_s8  ;;  %p1800_p11 = scmp.lt.u32.totalorder %s1792_s8, %s2345_s28 }
 0x595   : > { %p1794_p13 = pnand %p1793_p7, %p2454_p4 }
 0x596   : > { %p1799_p3 = por %p1798_p1, %p1797_p2 }
 0x597   : > { %p1795_p9 = pneg %p1794_p13 }
 0x598   : > { %p1801_p10 = por %p1800_p11, %p1799_p3 }
 0x59a   : > { %p1802_p6 = pnand %p1801_p10, %p1795_p9 }
 0x59c   : > { %1805 = shalt.err (!%p1802_p6)
}
 0x59d   : > { %1480 = dma.vmem_to_hbm [thread:$0]  (%p2454_p4), %s2347_s11, 128, %s2345_s28, %s1107_s16  }
 0x59e PF: > { %s2455_s18 = sld [smem:[#allocation23_spill]]  ;;  %s2456_s14 = sld [smem:[#allocation22_spill]] }
 0x59f   : > { %s1154_s22 = sand.u32 1, %s1852_s24  }
 0x5a0   : > { %s1155_s21 = scalar_lea.sflag [#allocation6], %s1154_s22 }
 0x5a4   : > { %p2457_p8 = scmp.ne.s32.totalorder %s2455_s18, 0  ;;  %p2458_p0 = scmp.ge.s32.totalorder %s2456_s14, 2 }
 0x5a6   : > { %p1502_p5 = pnand %p2458_p0, %p2457_p8 }
 0x5a8   : > { %1843 = dma.done.wait (!%p1502_p5), %s1155_s21, 128  }
 0x5a9   : > { %1845 = vsyncadd (!%p1502_p5), %s1155_s21, 4294967168  ;;  %s1164_s13 = scalar_lea.sflag [#allocation15], %s1154_s22 }
 0x5aa   : > { %1847 = dma.done.wait (!%p1502_p5), %s1164_s13, 512  }
 0x5ab   : > { %1849 = vsyncadd (!%p1502_p5), %s1164_s13, 4294966784  ;;  %s31_s29 = sadd.s32 1, %s2456_s14   ;;  %s2459_s19 = sld [smem:[#allocation25_spill]] }
 0x5ac   : > { %p28_p12 = scmp.ge.s32.totalorder %s31_s29, 4   ;;  %s2460_s27 = sld [smem:[#allocation21_spill]] }
 0x5ad   : > { %s2461_s28 = sld [smem:[#allocation24_spill]]  ;;  %s2462_s24 = smov %s1856_s25 }
 0x5ae   : > { %s2463_s25 = smov %s1860_s26  ;;  %30 = sbr.rel (!%p28_p12) target bundleno = 15 (0xf), region = 145 }
 0x5b1   : > { %s2464_s26 = smov %s2459_s19 }
 0x5b5   :  { %1169 = vsyncpa [#allocation5], 1 }
 0x5b6   :  { %1171 = vsyncpa [#allocation5 + $0x1], 1 }
 0x5b7   :  { %1172 = vsyncpa [#allocation8], 1 }
 0x5b8   :  { %1174 = vsyncpa [#allocation8 + $0x1], 1 }
 0x5b9   :  { %1175 = vsyncpa [#allocation11], 1 }
 0x5ba   :  { %1176 = vsyncpa [#allocation6], 1 }
 0x5bb   :  { %1178 = vsyncpa [#allocation6 + $0x1], 1 }
 0x5bc   :  { %1179 = vsyncpa [#allocation15], 1 }
 0x5bd   :  { %1181 = vsyncpa [#allocation15 + $0x1], 1 }

</bundles_post_ra>
